<compile_context>
chip_gen: v5e
topology: v5e:2x2
jax: 0.10.0
libtpu: 0.0.40
codegen_flags: <defaults>
</compile_context>

<pallas_src>
import jax
import jax.numpy as jnp
from jax.experimental import pallas as pl
from jax.experimental.pallas import tpu as pltpu


def _make_attn_pool_kernel(seq_len, seq_block, has_mask):
    """Kernel body with static params (true S, tile size, mask presence) baked in."""
    has_tail = (seq_len % seq_block) != 0  # static: only emit tail masking if needed

    def kernel(*refs):
        if has_mask:
            h_ref, mask_ref, w_ref, out_ref, m_sc, l_sc, acc_sc = refs
        else:
            h_ref, w_ref, out_ref, m_sc, l_sc, acc_sc = refs
            mask_ref = None

        si = pl.program_id(1)

        @pl.when(si == 0)
        def _init():
            m_sc[...] = jnp.full(m_sc.shape, -jnp.inf, m_sc.dtype)
            l_sc[...] = jnp.zeros(l_sc.shape, l_sc.dtype)
            acc_sc[...] = jnp.zeros(acc_sc.shape, acc_sc.dtype)

        bt, ts, hh = h_ref.shape
        h = h_ref[...]                                     # (Bt, Ts, H) native dtype

        if has_tail:
            # Zero hidden rows past the true sequence length (tail of the last
            # sequence tile holds unspecified data; keeps the MXU NaN-free).
            row = jax.lax.broadcasted_iota(jnp.int32, (ts, 1), 0) + si * seq_block
            row_ok = (row < seq_len)[None]                 # (1, Ts, 1)
            h = jnp.where(row_ok, h, jnp.zeros_like(h))

        # Scores on the MXU: projection weight acts as a single "query" row.
        w_b = jnp.broadcast_to(w_ref[...], (bt, 1, hh))
        s = jnp.einsum("bqh,bsh->bqs", w_b, h,
                       preferred_element_type=jnp.float32)  # (Bt, 1, Ts) f32

        if has_mask:
            # masked_fill(mask == 0, -1e9), mask layout matches scores directly.
            s = jnp.where(mask_ref[...] == 0, jnp.float32(-1e9), s)
        if has_tail:
            # Padded sequence positions get -inf so they contribute exactly 0
            # weight even for fully-masked rows (uniform-softmax fallback).
            col = jax.lax.broadcasted_iota(jnp.int32, (1, ts), 1) + si * seq_block
            col_ok = (col < seq_len)[None]                 # (1, 1, Ts)
            s = jnp.where(col_ok, s, -jnp.inf)

        # Online softmax across sequence tiles.
        m_prev = m_sc[...]
        m_new = jnp.maximum(m_prev, jnp.max(s, axis=-1, keepdims=True))
        alpha = jnp.exp(m_prev - m_new)
        p = jnp.exp(s - m_new)                             # (Bt, 1, Ts)
        l_sc[...] = alpha * l_sc[...] + jnp.sum(p, axis=-1, keepdims=True)
        acc_sc[...] = alpha * acc_sc[...] + jnp.einsum(
            "bqs,bsh->bqh", p.astype(h.dtype), h,
            preferred_element_type=jnp.float32)
        m_sc[...] = m_new

        @pl.when(si == pl.num_programs(1) - 1)
        def _finalize():
            out_ref[...] = (acc_sc[...] / l_sc[...]).astype(out_ref.dtype)

    return kernel


def attention_pooling(hidden_states, weight, bias=None, attention_mask=None,
                      *, seq_block=None, batch_block=None):
    """Pallas TPU AttentionPooling forward.

    hidden_states: [B, S, H] (f32 or bf16)
    weight: [1, H] (nn.Linear(hidden_dim, 1) weight); bias: [1] (unused in the
        kernel: softmax is shift-invariant to a per-row constant, and the torch
        masked_fill overwrites masked scores, so the output is unchanged).
    attention_mask: optional [B, S] (0 => masked out)
    returns: [B, H] in hidden_states.dtype
    """
    del bias  # shift-invariant under softmax; see docstring.
    B, S, H = hidden_states.shape
    dtype = hidden_states.dtype
    itemsize = jnp.dtype(dtype).itemsize

    # ---- Generation-aware VMEM budgeting (v5e/v6e: 128 MiB, v7x: 64 MiB). ----
    try:
        vmem_phys = int(pltpu.get_tpu_info().vmem_capacity_bytes)
    except Exception:
        vmem_phys = 64 * 1024 * 1024              # conservative (v7x-sized) fallback
    vmem_limit = min(vmem_phys * 3 // 4, 96 * 1024 * 1024)   # v5e/v6e ~96MiB, v7x ~48MiB
    hidden_budget = vmem_limit // 3               # per hidden buffer (x2 double-buffered)

    # ---- Tiling. ----
    Bt = batch_block if batch_block is not None else min(8, B)
    if batch_block is None and B >= 2:
        Bt = min(Bt, -(-B // 2))                  # >=2 steps on the parallel axis (v7x: 2 TCs)
    # Guard: shrink the batch tile before a forced 128-row sequence tile blows the budget.
    while Bt > 1 and Bt * 128 * H * itemsize > hidden_budget:
        Bt = max(1, Bt // 2)

    if seq_block is None:
        ts_cap = max(1, hidden_budget // max(1, Bt * H * itemsize))
        Ts = S if S <= ts_cap else max(128, (ts_cap // 128) * 128)
    else:
        Ts = min(int(seq_block), S)
    if Ts < S and Ts % 128 != 0:
        raise ValueError("sequence tile must be a multiple of 128 when tiling S")

    # Make sure the scoped limit covers at least the chosen working set.
    tile_bytes = Bt * Ts * H * itemsize
    vmem_limit = max(vmem_limit, min(vmem_phys, 2 * tile_bytes + (8 << 20)))

    grid = (pl.cdiv(B, Bt), pl.cdiv(S, Ts))

    # Weight cast to the hidden dtype (bf16 path: bf16 x bf16 -> f32 on the MXU;
    # slightly less precise scores than the f32 reference, acceptable).
    w3 = weight.reshape(1, 1, H).astype(dtype)
    has_mask = attention_mask is not None

    in_specs = [pl.BlockSpec((Bt, Ts, H), lambda bi, si: (bi, si, 0))]   # hidden
    args = [hidden_states]
    if has_mask:
        mask3 = (attention_mask != 0).astype(jnp.int32).reshape(B, 1, S)
        in_specs.append(pl.BlockSpec((Bt, 1, Ts), lambda bi, si: (bi, 0, si)))  # mask
        args.append(mask3)
    in_specs.append(pl.BlockSpec((1, 1, H), lambda bi, si: (0, 0, 0)))   # weight
    args.append(w3)

    kernel = _make_attn_pool_kernel(S, Ts, has_mask)

    out = pl.pallas_call(
        kernel,
        out_shape=jax.ShapeDtypeStruct((B, 1, H), dtype),
        grid_spec=pltpu.PrefetchScalarGridSpec(
            num_scalar_prefetch=0,
            grid=grid,
            in_specs=in_specs,
            out_specs=pl.BlockSpec((Bt, 1, H), lambda bi, si: (bi, 0, 0)),
            scratch_shapes=[
                pltpu.VMEM((Bt, 1, 1), jnp.float32),   # m (running max)
                pltpu.VMEM((Bt, 1, 1), jnp.float32),   # l (normalizer)
                pltpu.VMEM((Bt, 1, H), jnp.float32),   # acc (weighted sum)
            ],
        ),
        compiler_params=pltpu.CompilerParams(
            dimension_semantics=("parallel", "arbitrary"),
            vmem_limit_bytes=int(vmem_limit)),
    )(*args)

    return out.reshape(B, H)


def _reference(hidden_states, weight, bias, attention_mask=None):
    h = hidden_states.astype(jnp.float32)
    scores = jnp.einsum("bsh,h->bs", h, weight.reshape(-1).astype(jnp.float32))
    scores = scores + bias.astype(jnp.float32)[0]
    if attention_mask is not None:
        scores = jnp.where(attention_mask == 0, -1e9, scores)
    attn = jax.nn.softmax(scores, axis=1)[..., None]
    return jnp.sum(h * attn, axis=1)


if __name__ == "__main__":
    key = jax.random.PRNGKey(0)
    B, S, H = 2, 8, 32
    k1, k2, k3, k4 = jax.random.split(key, 4)
    hidden_states = jax.random.normal(k1, (B, S, H), dtype=jnp.float32)
    weight = jax.random.normal(k2, (1, H), dtype=jnp.float32) / jnp.sqrt(H)
    bias = jax.random.normal(k3, (1,), dtype=jnp.float32) * 0.01
    attention_mask = (jax.random.uniform(k4, (B, S)) > 0.25).astype(jnp.int32)

    pooled = jax.block_until_ready(
        attention_pooling(hidden_states, weight, bias, attention_mask))
    ref = _reference(hidden_states, weight, bias, attention_mask)
    assert pooled.shape == (B, H)
    assert jnp.allclose(pooled, ref, atol=1e-3, rtol=1e-3), "masked path mismatch"

    # no-mask path
    pooled_nm = jax.block_until_ready(
        attention_pooling(hidden_states, weight, bias))
    ref_nm = _reference(hidden_states, weight, bias)
    assert jnp.allclose(pooled_nm, ref_nm, atol=1e-3, rtol=1e-3), "no-mask mismatch"

    # ragged-tail path: non-divisible S and B, H not a multiple of 128,
    # multi-tile online softmax, and a fully-masked row (edge case).
    j1, j2, j3, j4 = jax.random.split(jax.random.PRNGKey(1), 4)
    B2, S2, H2 = 3, 200, 96
    h2 = jax.random.normal(j1, (B2, S2, H2), dtype=jnp.float32)
    w2 = jax.random.normal(j2, (1, H2), dtype=jnp.float32) / jnp.sqrt(H2)
    b2 = jax.random.normal(j3, (1,), dtype=jnp.float32) * 0.01
    m2 = (jax.random.uniform(j4, (B2, S2)) > 0.1).astype(jnp.int32)
    m2 = m2.at[1, :].set(0)   # fully-masked row -> uniform-softmax fallback
    out2 = jax.block_until_ready(attention_pooling(h2, w2, b2, m2, seq_block=128))
    ref2 = _reference(h2, w2, b2, m2)
    assert out2.shape == (B2, H2)
    assert jnp.allclose(out2, ref2, atol=2e-3, rtol=2e-3), "ragged-tail mismatch"

    # bf16 storage path (halved HBM traffic); looser tolerance for bf16 rounding
    out_bf = jax.block_until_ready(
        attention_pooling(hidden_states.astype(jnp.bfloat16), weight, bias,
                          attention_mask))
    assert jnp.allclose(out_bf.astype(jnp.float32), ref, atol=5e-2, rtol=5e-2), \
        "bf16 path mismatch"

    print("KERNEL_OK")
</pallas_src>

<mosaic_0001>
module attributes {stable_mosaic.version = 11 : i64} {
  func.func @kernel(%arg0: i32, %arg1: i32, %arg2: memref<1x8x32xf32, #tpu.memory_space<vmem>>, %arg3: memref<1x1x8xi32, #tpu.memory_space<vmem>>, %arg4: memref<1x1x32xf32, #tpu.memory_space<vmem>>, %arg5: memref<1x1x32xf32, #tpu.memory_space<vmem>>, %arg6: memref<1x1x1xf32, #tpu.memory_space<vmem>>, %arg7: memref<1x1x1xf32, #tpu.memory_space<vmem>>, %arg8: memref<1x1x32xf32, #tpu.memory_space<vmem>>) attributes {dimension_semantics = [#tpu.dimension_semantics<parallel>, #tpu.dimension_semantics<arbitrary>], iteration_bounds = array<i64: 2, 1>, scalar_prefetch = 0 : i64, scratch_operands = 3 : i64, tpu.core_type = #tpu.core_type<tc>, window_params = [{transform_indices = @transform_0, window_bounds = array<i64: 1, 8, 32>}, {transform_indices = @transform_1, window_bounds = array<i64: 1, 1, 8>}, {pipeline_mode = #tpu.pipeline_mode<synchronous>, transform_indices = @transform_2, window_bounds = array<i64: 1, 1, 32>}, {transform_indices = @transform_3, window_bounds = array<i64: 1, 1, 32>}]} {
    %c0_i32 = arith.constant 0 : i32
    %0 = arith.cmpi eq, %arg1, %c0_i32 : i32
    %1 = arith.extui %0 : i1 to i32
    %c0_i32_0 = arith.constant 0 : i32
    %2 = arith.cmpi ne, %1, %c0_i32_0 : i32
    scf.if %2 {
      %cst_34 = arith.constant 0xFF800000 : f32
      %36 = vector.broadcast %cst_34 : f32 to vector<1x1x1xf32>
      %c0_35 = arith.constant 0 : index
      %c0_36 = arith.constant 0 : index
      %c0_37 = arith.constant 0 : index
      %37 = vector.load %arg6[%c0_35, %c0_36, %c0_37] : memref<1x1x1xf32, #tpu.memory_space<vmem>>, vector<1x1x1xf32>
      tpu.vector_store %arg6[%c0_35, %c0_36, %c0_37], %36 {strides = array<i32>} : memref<1x1x1xf32, #tpu.memory_space<vmem>>, vector<1x1x1xf32>,
      %cst_38 = arith.constant 0.000000e+00 : f32
      %38 = vector.broadcast %cst_38 : f32 to vector<1x1x1xf32>
      %c0_39 = arith.constant 0 : index
      %c0_40 = arith.constant 0 : index
      %c0_41 = arith.constant 0 : index
      %39 = vector.load %arg7[%c0_39, %c0_40, %c0_41] : memref<1x1x1xf32, #tpu.memory_space<vmem>>, vector<1x1x1xf32>
      tpu.vector_store %arg7[%c0_39, %c0_40, %c0_41], %38 {strides = array<i32>} : memref<1x1x1xf32, #tpu.memory_space<vmem>>, vector<1x1x1xf32>,
      %cst_42 = arith.constant 0.000000e+00 : f32
      %40 = vector.broadcast %cst_42 : f32 to vector<1x1x32xf32>
      %c0_43 = arith.constant 0 : index
      %c0_44 = arith.constant 0 : index
      %c0_45 = arith.constant 0 : index
      %41 = vector.load %arg8[%c0_43, %c0_44, %c0_45] : memref<1x1x32xf32, #tpu.memory_space<vmem>>, vector<1x1x32xf32>
      tpu.vector_store %arg8[%c0_43, %c0_44, %c0_45], %40 {strides = array<i32>} : memref<1x1x32xf32, #tpu.memory_space<vmem>>, vector<1x1x32xf32>,
    } else {
    }
    %c0 = arith.constant 0 : index
    %c0_1 = arith.constant 0 : index
    %c0_2 = arith.constant 0 : index
    %3 = vector.load %arg2[%c0, %c0_1, %c0_2] : memref<1x8x32xf32, #tpu.memory_space<vmem>>, vector<1x8x32xf32>
    %c0_3 = arith.constant 0 : index
    %c0_4 = arith.constant 0 : index
    %c0_5 = arith.constant 0 : index
    %4 = vector.load %arg4[%c0_3, %c0_4, %c0_5] : memref<1x1x32xf32, #tpu.memory_space<vmem>>, vector<1x1x32xf32>
    "tpu.trace_start"() <{level = 10 : i32, message = "bqh,bsh->bqs"}> : () -> ()
    %cst = arith.constant dense<0.000000e+00> : vector<1x1x8xf32>
    %5 = tpu.matmul %4, %3, %cst {dimension_numbers = #tpu.dot_dimension_numbers<[2], [2], [1], [1], [0, 0, 0, 1, 1, 1], [0], [0]>} : vector<1x1x32xf32>, vector<1x8x32xf32>, vector<1x1x8xf32> -> vector<1x1x8xf32>
    "tpu.trace_stop"() : () -> ()
    %c0_6 = arith.constant 0 : index
    %c0_7 = arith.constant 0 : index
    %c0_8 = arith.constant 0 : index
    %6 = vector.load %arg3[%c0_6, %c0_7, %c0_8] : memref<1x1x8xi32, #tpu.memory_space<vmem>>, vector<1x1x8xi32>
    %c0_i32_9 = arith.constant 0 : i32
    %7 = vector.broadcast %c0_i32_9 : i32 to vector<1x1x8xi32>
    %8 = arith.cmpi eq, %6, %7 : vector<1x1x8xi32>
    %cst_10 = arith.constant -1.000000e+09 : f32
    %9 = vector.broadcast %cst_10 : f32 to vector<1x1x8xf32>
    %10 = arith.select %8, %9, %5 : vector<1x1x8xi1>, vector<1x1x8xf32>
    %c0_11 = arith.constant 0 : index
    %c0_12 = arith.constant 0 : index
    %c0_13 = arith.constant 0 : index
    %11 = vector.load %arg6[%c0_11, %c0_12, %c0_13] : memref<1x1x1xf32, #tpu.memory_space<vmem>>, vector<1x1x1xf32>
    %cst_14 = arith.constant dense<0xFF800000> : vector<1x1xf32>
    %12 = vector.multi_reduction <maximumf>, %10, %cst_14 [2] : vector<1x1x8xf32> to vector<1x1xf32>
    %13 = vector.shape_cast %12 : vector<1x1xf32> to vector<1x1x1xf32>
    %14 = arith.maximumf %11, %13 : vector<1x1x1xf32>
    %15 = arith.subf %11, %14 : vector<1x1x1xf32>
    %16 = math.exp %15 : vector<1x1x1xf32>
    %17 = vector.broadcast %14 : vector<1x1x1xf32> to vector<1x1x8xf32>
    %18 = arith.subf %10, %17 : vector<1x1x8xf32>
    %19 = math.exp %18 : vector<1x1x8xf32>
    %c0_15 = arith.constant 0 : index
    %c0_16 = arith.constant 0 : index
    %c0_17 = arith.constant 0 : index
    %20 = vector.load %arg7[%c0_15, %c0_16, %c0_17] : memref<1x1x1xf32, #tpu.memory_space<vmem>>, vector<1x1x1xf32>
    %21 = arith.mulf %16, %20 : vector<1x1x1xf32>
    %cst_18 = arith.constant dense<0.000000e+00> : vector<1x1xf32>
    %22 = vector.multi_reduction <add>, %19, %cst_18 [2] : vector<1x1x8xf32> to vector<1x1xf32>
    %23 = vector.shape_cast %22 : vector<1x1xf32> to vector<1x1x1xf32>
    %24 = arith.addf %21, %23 : vector<1x1x1xf32>
    %c0_19 = arith.constant 0 : index
    %c0_20 = arith.constant 0 : index
    %c0_21 = arith.constant 0 : index
    %25 = vector.load %arg7[%c0_19, %c0_20, %c0_21] : memref<1x1x1xf32, #tpu.memory_space<vmem>>, vector<1x1x1xf32>
    tpu.vector_store %arg7[%c0_19, %c0_20, %c0_21], %24 {strides = array<i32>} : memref<1x1x1xf32, #tpu.memory_space<vmem>>, vector<1x1x1xf32>,
    %c0_22 = arith.constant 0 : index
    %c0_23 = arith.constant 0 : index
    %c0_24 = arith.constant 0 : index
    %26 = vector.load %arg8[%c0_22, %c0_23, %c0_24] : memref<1x1x32xf32, #tpu.memory_space<vmem>>, vector<1x1x32xf32>
    %27 = vector.broadcast %16 : vector<1x1x1xf32> to vector<1x1x32xf32>
    %28 = arith.mulf %27, %26 : vector<1x1x32xf32>
    "tpu.trace_start"() <{level = 10 : i32, message = "bqs,bsh->bqh"}> : () -> ()
    %cst_25 = arith.constant dense<0.000000e+00> : vector<1x1x32xf32>
    %29 = tpu.matmul %19, %3, %cst_25 {dimension_numbers = #tpu.dot_dimension_numbers<[2], [1], [1], [2], [0, 0, 0, 1, 1, 2], [0], [0]>} : vector<1x1x8xf32>, vector<1x8x32xf32>, vector<1x1x32xf32> -> vector<1x1x32xf32>
    "tpu.trace_stop"() : () -> ()
    %30 = arith.addf %28, %29 : vector<1x1x32xf32>
    %c0_26 = arith.constant 0 : index
    %c0_27 = arith.constant 0 : index
    %c0_28 = arith.constant 0 : index
    %31 = vector.load %arg8[%c0_26, %c0_27, %c0_28] : memref<1x1x32xf32, #tpu.memory_space<vmem>>, vector<1x1x32xf32>
    tpu.vector_store %arg8[%c0_26, %c0_27, %c0_28], %30 {strides = array<i32>} : memref<1x1x32xf32, #tpu.memory_space<vmem>>, vector<1x1x32xf32>,
    %c0_29 = arith.constant 0 : index
    %c0_30 = arith.constant 0 : index
    %c0_31 = arith.constant 0 : index
    %32 = vector.load %arg6[%c0_29, %c0_30, %c0_31] : memref<1x1x1xf32, #tpu.memory_space<vmem>>, vector<1x1x1xf32>
    tpu.vector_store %arg6[%c0_29, %c0_30, %c0_31], %14 {strides = array<i32>} : memref<1x1x1xf32, #tpu.memory_space<vmem>>, vector<1x1x1xf32>,
    %c0_i32_32 = arith.constant 0 : i32
    %33 = arith.cmpi eq, %arg1, %c0_i32_32 : i32
    %34 = arith.extui %33 : i1 to i32
    %c0_i32_33 = arith.constant 0 : i32
    %35 = arith.cmpi ne, %34, %c0_i32_33 : i32
    scf.if %35 {
      %c0_34 = arith.constant 0 : index
      %c0_35 = arith.constant 0 : index
      %c0_36 = arith.constant 0 : index
      %36 = vector.load %arg8[%c0_34, %c0_35, %c0_36] : memref<1x1x32xf32, #tpu.memory_space<vmem>>, vector<1x1x32xf32>
      %c0_37 = arith.constant 0 : index
      %c0_38 = arith.constant 0 : index
      %c0_39 = arith.constant 0 : index
      %37 = vector.load %arg7[%c0_37, %c0_38, %c0_39] : memref<1x1x1xf32, #tpu.memory_space<vmem>>, vector<1x1x1xf32>
      %38 = vector.broadcast %37 : vector<1x1x1xf32> to vector<1x1x32xf32>
      %39 = arith.divf %36, %38 : vector<1x1x32xf32>
      %c0_40 = arith.constant 0 : index
      %c0_41 = arith.constant 0 : index
      %c0_42 = arith.constant 0 : index
      %40 = vector.load %arg5[%c0_40, %c0_41, %c0_42] : memref<1x1x32xf32, #tpu.memory_space<vmem>>, vector<1x1x32xf32>
      tpu.vector_store %arg5[%c0_40, %c0_41, %c0_42], %39 {strides = array<i32>} : memref<1x1x32xf32, #tpu.memory_space<vmem>>, vector<1x1x32xf32>,
    } else {
    }
    return
  }
  func.func @transform_0(%arg0: i32, %arg1: i32) -> (i32, i32, i32) {
    %c0_i32 = arith.constant 0 : i32
    %c0_i32_0 = arith.constant 0 : i32
    return %arg0, %arg1, %c0_i32 : i32, i32, i32
  }
  func.func @transform_1(%arg0: i32, %arg1: i32) -> (i32, i32, i32) {
    %c0_i32 = arith.constant 0 : i32
    %c0_i32_0 = arith.constant 0 : i32
    return %arg0, %c0_i32, %arg1 : i32, i32, i32
  }
  func.func @transform_2(%arg0: i32, %arg1: i32) -> (i32, i32, i32) {
    %c0_i32 = arith.constant 0 : i32
    %c0_i32_0 = arith.constant 0 : i32
    %c0_i32_1 = arith.constant 0 : i32
    %c0_i32_2 = arith.constant 0 : i32
    return %c0_i32, %c0_i32_0, %c0_i32_1 : i32, i32, i32
  }
  func.func @transform_3(%arg0: i32, %arg1: i32) -> (i32, i32, i32) {
    %c0_i32 = arith.constant 0 : i32
    %c0_i32_0 = arith.constant 0 : i32
    %c0_i32_1 = arith.constant 0 : i32
    return %arg0, %c0_i32, %c0_i32_0 : i32, i32, i32
  }
}

</mosaic_0001>

<bundles_post_ra>
// kernel: tpu_custom_call.1
= control target key start
LH: loop header
LB: loop body
LE: loop exit
PB: predicated region body
PF: predicated region fallthrough
CT: control target
= control target key end

     0   :  { %8 = vsyncpa [#allocation6], 0  ;;  %s884_s0 = inlined_call_operand.hbm [shape: f32[2,8,32], index: 0, kind: input, shape index: {}]   ;;  %s885_s1 = inlined_call_operand.hbm [shape: s32[2,1,8], index: 1, kind: input, shape index: {}]   ;;  %s886_s2 = inlined_call_operand.vmem [shape: f32[1,1,32], index: 2, kind: input, shape index: {}]   ;;  %s887_s3 = inlined_call_operand.hbm [shape: f32[2,1,32], index: 3, kind: output, shape index: {}]  }
   0x1   :  { %10 = vsyncpa [#allocation6 + $0x1], 0 }
   0x2   :  { %11 = vsyncpa [#allocation9], 0 }
   0x3   :  { %13 = vsyncpa [#allocation9 + $0x1], 0 }
   0x4   :  { %14 = vsyncpa [#allocation7], 0 }
   0x5   :  { %16 = vsyncpa [#allocation7 + $0x1], 0  ;;  %s741_s12 = smov 0   ;;  %s743_s13 = smov 0  }
   0x6   :  { %s745_s14 = smov 0   ;;  %s747_s15 = smov 0  }
   0x7   :  { %s749_s16 = smov 0   ;;  %s751_s17 = smov 0  }
   0x8 LB: > { %s478_s18 = sadd.s32 4294967295, %s716_s17   ;;  %s479_s19 = sadd.s32 4294967294, %s716_s17   ;;  %s716_s17 = sphi %s751_s17, %s22_s17   ;;  %s712_s16 = sphi %s749_s16, %s896_s16   ;;  %s708_s15 = sphi %s747_s15, %s895_s15   ;;  %s704_s14 = sphi %s745_s14, %s894_s14   ;;  %s700_s13 = sphi %s743_s13, %s893_s13   ;;  %s696_s12 = sphi %s741_s12, %s892_s12  }
   0x9   : > { %s34_s20 = sadd.s32 1, %s712_s16  ;;  %s43_s21 = sadd.s32 1, %s704_s14 }
   0xa   : > { %p36_p0 = scmp.ge.s32.totalorder %s34_s20, 2  ;;  %p50_p1 = scmp.ne.s32.totalorder %s704_s14, %s700_s13 }
   0xb   : > { %p51_p2 = scmp.eq.s32.totalorder %s716_s17, 0  ;;  %p56_p3 = scmp.ne.s32.totalorder %s700_s13, %s696_s12 }
   0xc   : > { %s898_s20 = smov (%p36_p0, %s34_s20), 0  ;;  %p57_p5 = scmp.eq.s32.totalorder %s478_s18, 0 }
   0xd   : > { %p782_p4 = por %p51_p2, %p50_p1  ;;  %s38_s23 = ssub.s32 %s712_s16, %s898_s20 }
   0xe   : > { %p129_p6 = scmp.eq.s32.totalorder %s478_s18, 1  ;;  %p41_p7 = scmp.eq.s32.totalorder %s38_s23, 0 }
   0xf   : > { %p788_p8 = por %p57_p5, %p56_p3  ;;  %p135_p10 = scmp.eq.s32.totalorder %s479_s19, 1 }
  0x10   : > { %p792_p9 = por %p129_p6, %p50_p1  ;;  %p481_p12 = scmp.ge.s32.totalorder %s716_s17, 2 }
  0x11   : > { %s797_s26 = scalar_select %p41_p7, %s704_s14, %s43_s21  }
  0x12   : > { %p799_p11 = por %p135_p10, %p56_p3  ;;  %p508_p13 = scmp.lt.s32.totalorder %s716_s17, 2 }
  0x13   : > { %s158_s28 = sand.u32 1, %s704_s14   ;;  %s483_s30 = sshll.u32 %s712_s16, 3 }
  0x14   : > { %s482_s29 = sshll.u32 %s158_s28, 3  ;;  %s167_s6 = scalar_lea.hbm %s884_s0, %s483_s30 }
  0x15   : > { %s162_s7 = scalar_lea.vmem [#allocation5], %s482_s29  ;;  %s169_s9 = sshll.u32 %s167_s6, 4  ;;  %s170_s9 = int_to_ptr.hbm [resolvable:$true] %s169_s9 }
  0x16   : > { %s171_s8 = sshll.u32 %s162_s7, 4  ;;  %p498_p0 = pnand %p508_p13, %p782_p4  ;;  %s172_s8 = int_to_ptr.vmem [resolvable:$true] %s171_s8 }
  0x17   : > { %p484_p1 = scmp.ge.s32.totalorder %s716_s17, 1  ;;  %p194_p2 = scmp.lt.s32.totalorder %s716_s17, 3 }
  0x18   : > { %s159_s10 = scalar_lea.sflag [#allocation6], %s158_s28  ;;  %s185_s19 = scalar_lea.hbm %s885_s1, %s712_s16 }
  0x19   : > { %500 = dma.hbm_to_vmem [thread:$0]  (!%p498_p0), %s170_s9, 128, %s172_s8, %s159_s10  }
  0x1a   : > { %p195_p3 = pnand %p484_p1, %p194_p2  ;;  %s181_s21 = scalar_lea.vmem [#allocation8], %s158_s28 }
  0x1b   : > { %s189_s23 = sshll.u32 %s181_s21, 4  ;;  %s187_s4 = sshll.u32 %s185_s19, 4  ;;  %s190_s23 = int_to_ptr.vmem [resolvable:$true] %s189_s23  ;;  %s188_s4 = int_to_ptr.hbm [resolvable:$true] %s187_s4 }
  0x1c   : > { %s179_s29 = scalar_lea.sflag [#allocation9], %s158_s28  ;;  %198 = sbr.rel (%p195_p3) target bundleno = 680 (0x2a8), region = 32 }
  0x1d   : > { %503 = dma.hbm_to_vmem [thread:$0]  (!%p498_p0), %s188_s4, 16, %s190_s23, %s179_s29  }
  0x1e   : > { %s819_s22 = sand.u32 (!%p195_p3), 1, %s700_s13  }
  0x1f   : > { %s485_s30 = sshll.u32 (!%p195_p3), %s819_s22, 3  ;;  %s201_s5 = scalar_lea.sflag (!%p195_p3), [#allocation6], %s819_s22 }
  0x20   : > { %s204_s6 = scalar_lea.vmem (!%p195_p3), [#allocation5], %s485_s30 }
  0x21   : > { %683 = dma.done.wait (%p788_p8), %s201_s5, 128  }
  0x22   : > { %685 = vsyncadd (%p788_p8), %s201_s5, 4294967168  ;;  %s211_s28 = scalar_lea.sflag [#allocation9], %s819_s22  ;;  %s213_s7 = scalar_lea.vmem [#allocation8], %s819_s22 }
  0x23   : > { %687 = dma.done.wait (%p788_p8), %s211_s28, 16  }
  0x24   : > { %689 = vsyncadd (%p788_p8), %s211_s28, 4294967280  ;;  %vm251_vm0 = vcmask 261120   ;;  %v249_v0 = vld [vmem:[%s204_s6] sm:$0xff]  ;;  %v250_v1 = vld [vmem:[%s886_s2] sm:$0x1]  ;;  %vm244_vm1 = vcmask 0   ;;  %s379_s11 = scalar_lea.hbm %s887_s3, %s708_s15 }
  0x25   : > { %486 = vmatpush.xpose.msk.msra.mxu0 %vm251_vm0, %v249_v0  ;;  %334 = vmatpush.msra.mxu1 %v249_v0  ;;  %v718_v2 = vmov -inf   ;;  %v278_v3 = vld [vmem:[%s213_s7] sm:$0x1]  ;;  %vm282_vm3 = vcmask 57344   ;;  %v719_v7 = vmov 0   ;;  %v720_v8 = vmov 0.0  }
  0x26   : > { %245 = vst.msk [vmem:[#allocation2] sm:$0x1] %vm244_vm1, %v718_v2  ;;  %vm279_vm2 = vcmp.eq.s32.totalorder %v278_v3, 0  ;;  %561 = vset.pattern.permute.xlu0 %v719_v7  ;;  %563 = vset.pattern.permute.xlu2 %v719_v7  ;;  %vm247_vm4 = vcmask 253952   ;;  %vm315_vm5 = vcmask 64512   ;;  %s239_s18 = scalar_lea.vmem [#allocation10], %s819_s22 }
  0x27   : > { %562 = vset.pattern.permute.xlu1 %v719_v7  ;;  %246 = vst.msk [vmem:[#allocation3] sm:$0x1] %vm244_vm1, %v720_v8  ;;  %s381_s19 = sshll.u32 %s239_s18, 4  ;;  %s383_s21 = sshll.u32 %s379_s11, 4  ;;  %s382_s19 = int_to_ptr.vmem [resolvable:$true] %s381_s19  ;;  %s384_s21 = int_to_ptr.hbm [resolvable:$true] %s383_s21 }
  0x28   : > { %487 = vmatmul.msk.f32.vlgmr.msra.gmra.mxu0 %vm251_vm0, %v250_v1  ;;  %248 = vst.msk [vmem:[#allocation4] sm:$0x1] %vm247_vm4, %v720_v8  ;;  %s371_s23 = scalar_lea.sflag [#allocation7], %s819_s22  ;;  %s644_s15 = sshra.s32 %s384_s21, 4  ;;  %s645_s15 = int_to_ptr.hbm [resolvable:$true] %s644_s15 }
  0x29   : > { %s646_s4 = scalar_lea.hbm %s645_s15, 1  ;;  %s650_s5 = scalar_lea.hbm %s887_s3, 2 }
  0x2a   : > { %p647_p4 = scmp.ne.s32.totalorder %s645_s15, %s646_s4  ;;  %p651_p7 = scmp.lt.s32.totalorder %s645_s15, %s887_s3 }
  0x2b   : > { %p652_p8 = scmp.lt.s32.totalorder %s650_s5, %s646_s4 }
  0x2c   : > { %p648_p5 = pnand %p647_p4, %p792_p9 }
  0x2d   : > { %v281_v9 = vld [vmem:[#allocation2] sm:$0x1]  ;;  %p653_p10 = por %p652_p8, %p651_p7 }
  0x2e   : > { %v299_v21 = vld [vmem:[#allocation3] sm:$0x1]  ;;  %p649_p6 = pneg %p648_p5 }
  0x2f   : > { %v307_v27 = vld [vmem:[#allocation4] sm:$0x1] }
  0x30   : > { %p654_p13 = pnand %p653_p10, %p649_p6 }
  0xa5   : > { %v275_v4 = vpop.f32.mrf.mxu0 }
  0xa6   : > { %v280_v5 = vsel %vm279_vm2, -1e+09, %v275_v4 }
  0xa7   : > { %v283_v6 = vsel %vm282_vm3, %v280_v5, -inf }
  0xa8   : > { %284 = vmax.xlane.f32.xlu0 %v283_v6 }
 0x11b   : > { %v285_v10 = vpop.xlane.xlu0 %284 }
 0x11c   : > { %v286_v11 = vmax.f32 %v281_v9, %v285_v10 }
 0x11e   : > { %v287_v12 = vsub.f32 %v281_v9, %v286_v11  ;;  %342 = vst.msk [vmem:[#allocation2] sm:$0x1] %vm244_vm1, %v286_v11  ;;  %292 = vperm.xlu0 %561, %v286_v11  }
 0x120   : > { %v288_v13 = vmul.f32 1.442695, %v287_v12 }
 0x122   : > { %564 = vpow2.f32 %v288_v13 }
 0x128   : > { %v565_v14 = vpop.eup %564 }
 0x129   : > { %310 = vperm.xlu2 %563, %v565_v14   ;;  %v300_v22 = vmul.f32 %v565_v14, %v299_v21 }
 0x183   : > { %v311_v24 = vpop.permute.xlu2 %310 }
 0x184   : > { %v313_v26 = vperm.slane %v311_v24, 0 }
 0x186   : > { %v314_v28 = vmul.f32 %v313_v26, %v307_v27 }
 0x190   : > { %v293_v15 = vpop.permute.xlu0 %292 }
 0x191   : > { %v295_v16 = vperm.slane %v293_v15, 0 }
 0x193   : > { %v296_v17 = vsub.f32 %v280_v5, %v295_v16 }
 0x195   : > { %v297_v18 = vmul.f32 1.442695, %v296_v17 }
 0x197   : > { %566 = vpow2.f32 %v297_v18 }
 0x19d   : > { %v567_v19 = vpop.eup %566 }
 0x19e   : > { %488 = vmatmul.msk.f32.vlgmr.msra.gmra.mxu1 %vm315_vm5, %v567_v19  ;;  %v301_v20 = vsel %vm282_vm3, %v567_v19, 0.0 }
 0x19f   : > { %302 = vadd.xlane.f32.xlu1 %v301_v20 }
 0x212   : > { %v303_v23 = vpop.xlane.xlu1 %302 }
 0x213   : > { %v304_v25 = vadd.f32 %v303_v23, %v300_v22 }
 0x215   : > { %306 = vst.msk [vmem:[#allocation3] sm:$0x1] %vm244_vm1, %v304_v25 }
 0x21b   : > { %v336_v29 = vpop.f32.mrf.mxu1 }
 0x21c   : > { %v339_v30 = vadd.f32 %v336_v29, %v314_v28  ;;  %v347_v31 = vld [vmem:[#allocation3] sm:$0x1] }
 0x21d   : > { %350 = vperm.xlu1 %562, %v347_v31  }
 0x21e   : > { %341 = vst.msk [vmem:[#allocation4] sm:$0x1] %vm247_vm4, %v339_v30 }
 0x225   : > { %v346_v43 = vld [vmem:[#allocation4] sm:$0x1] }
 0x28f   : > { %v351_v32 = vpop.permute.xlu1 %350 }
 0x290   : > { %v353_v33 = vperm.slane %v351_v32, 0 }
 0x292   : > { %568 = vrcp.f32 %v353_v33  ;;  %v365_v37 = vand.u32 2147483648, %v353_v33  ;;  %v363_v39 = vand.u32 2147483647, %v353_v33  ;;  %vm359_vm7 = vweird.f32 %v353_v33 }
 0x294   : > { %v366_v41 = vor.u32 1.1754944e-38, %v365_v37  ;;  %vm364_vm9 = vcmp.eq.f32.partialorder %v363_v39, 8.507059e+37 }
 0x298   : > { %v569_v34 = vpop.eup %568 }
 0x299   : > { %v355_v35 = vmul.f32 %v569_v34, %v353_v33  ;;  %vm360_vm6 = vweird.f32 %v569_v34 }
 0x29a   : > { %vm361_vm8 = vmor %vm359_vm7, %vm360_vm6 }
 0x29b   : > { %v356_v36 = vsub.f32 1.0, %v355_v35 }
 0x29d   : > { %v357_v38 = vmul.f32 %v569_v34, %v356_v36 }
 0x29f   : > { %v358_v40 = vadd.f32 %v569_v34, %v357_v38 }
 0x2a1   : > { %v362_v42 = vsel %vm361_vm8, %v569_v34, %v358_v40 }
 0x2a2   : > { %v367_v44 = vsel %vm364_vm9, %v366_v41, %v362_v42 }
 0x2a3   : > { %v368_v45 = vmul.f32 %v367_v44, %v346_v43 }
 0x2a5   : > { %369 = vst.msk [vmem:[%s239_s18] sm:$0x1] %vm247_vm4, %v368_v45 }
 0x2a6   : > { %657 = shalt.err (!%p654_p13)
}
 0x2a7   : > { %495 = dma.vmem_to_hbm [thread:$0]  (%p792_p9), %s382_s19, 16, %s384_s21, %s371_s23  }
 0x2a8 PF: > { %s395_s22 = sand.u32 1, %s696_s12   ;;  %p505_p0 = pnand %p481_p12, %p799_p11 }
 0x2a9   : > { %s396_s7 = scalar_lea.sflag [#allocation7], %s395_s22 }
 0x2aa   : > { %p506_p1 = pneg %p505_p0 }
 0x2ac   : > { %691 = dma.done.wait (%p506_p1), %s396_s7, 16  }
 0x2ad   : > { %693 = vsyncadd (%p506_p1), %s396_s7, 4294967280  ;;  %s22_s17 = sadd.s32 1, %s716_s17   ;;  %s892_s12 = smov %s700_s13 }
 0x2ae   : > { %p19_p2 = scmp.ge.s32.totalorder %s22_s17, 4   ;;  %s893_s13 = smov %s704_s14 }
 0x2af   : > { %s894_s14 = smov %s797_s26  ;;  %s895_s15 = smov %s712_s16 }
 0x2b0   : > { %s896_s16 = smov %s898_s20  ;;  %21 = sbr.rel (!%p19_p2) target bundleno = 8 (0x8), region = 98 }
 0x2b5   :  { %401 = vsyncpa [#allocation6], 1 }
 0x2b6   :  { %403 = vsyncpa [#allocation6 + $0x1], 1 }
 0x2b7   :  { %404 = vsyncpa [#allocation9], 1 }
 0x2b8   :  { %406 = vsyncpa [#allocation9 + $0x1], 1 }
 0x2b9   :  { %407 = vsyncpa [#allocation7], 1 }
 0x2ba   :  { %409 = vsyncpa [#allocation7 + $0x1], 1 }

</bundles_post_ra>
